<compile_context>
chip_gen: v5e
topology: v5e:2x2
jax: 0.10.0
libtpu: 0.0.40
codegen_flags: <defaults>
</compile_context>

<pallas_src>
import functools
import math

import jax
import jax.numpy as jnp
from jax.experimental import pallas as pl
from jax.experimental.pallas import tpu as pltpu

DEFAULT_TILE_M = 512
DEFAULT_TILE_K = 1024


def _round_up(x, m):
    return ((x + m - 1) // m) * m


def _k_tiling(vocab_size, tile_k):
    # x blocks are (tm, tk): tk must be a multiple of 128 (lane axis).
    tk = min(tile_k, _round_up(vocab_size, 128))
    tk = _round_up(tk, 128)
    k_pad = _round_up(vocab_size, tk)
    return tk, k_pad


def _token_embedding_kernel(x_ref, w_ref, b_ref, o_ref, acc_ref, *, scale):
    # x_ref: (tm, tk), w_ref: (tk, D_pad), b_ref: (1, D_pad),
    # o_ref: (tm, D_pad), acc_ref: (tm, D_pad) f32 scratch.
    k = pl.program_id(1)

    @pl.when(k == 0)
    def _():
        acc_ref[...] = jnp.zeros_like(acc_ref)

    acc_ref[...] += jnp.dot(
        x_ref[...], w_ref[...], preferred_element_type=jnp.float32
    )

    @pl.when(k == pl.num_programs(1) - 1)
    def _():
        z = acc_ref[...] + b_ref[...].astype(jnp.float32)  # broadcast (1, D)
        o_ref[...] = (jax.nn.sigmoid(z) * scale).astype(o_ref.dtype)


def prepare_token_embedding_params(weight, bias, *, tile_k=DEFAULT_TILE_K):
    """One-time layout prep: transpose nn.Linear weight to (V, D) and pad.

    weight: (d_embed, vocab_size)  -- nn.Linear convention
    bias:   (d_embed,)
    Returns (w_t_padded, bias_2d_padded) with shapes (K_pad, D_pad), (1, D_pad).
    """
    d_embed, vocab_size = weight.shape
    d_pad = _round_up(d_embed, 128)
    _, k_pad = _k_tiling(vocab_size, tile_k)
    w_t = jnp.pad(weight.T, ((0, k_pad - vocab_size), (0, d_pad - d_embed)))
    b2d = jnp.pad(bias, (0, d_pad - d_embed)).reshape(1, d_pad)
    return w_t, b2d


def token_embedding_prepared(
    x,
    w_t,
    b2d,
    *,
    d_embed,
    vocab_size,
    tile_m=DEFAULT_TILE_M,
    tile_k=DEFAULT_TILE_K,
    compute_dtype=None,
    out_dtype=None,
):
    """sigmoid(x @ W^T + b) * sqrt(d_embed) with pre-prepared (padded) params."""
    orig_shape = x.shape
    assert orig_shape[-1] == vocab_size

    tk, k_pad = _k_tiling(vocab_size, tile_k)
    k_pad_w, d_pad = w_t.shape
    assert k_pad_w == k_pad, "weight was prepared with a different tile_k"
    assert b2d.shape == (1, d_pad)

    x2d = x.reshape(-1, vocab_size)
    m = x2d.shape[0]
    tm = _round_up(min(tile_m, _round_up(m, 8)), 8)
    m_pad = _round_up(m, tm)

    if m_pad != m or k_pad != vocab_size:
        x2d = jnp.pad(x2d, ((0, m_pad - m), (0, k_pad - vocab_size)))

    if compute_dtype is not None:
        x2d = x2d.astype(compute_dtype)
        w_t = w_t.astype(compute_dtype)

    out_dtype = out_dtype if out_dtype is not None else x.dtype
    scale = math.sqrt(d_embed)
    grid = (m_pad // tm, k_pad // tk)

    # Explicit VMEM budget: double-buffered x/w/out tiles + bias + f32 acc.
    bpe_x = jnp.dtype(x2d.dtype).itemsize
    bpe_w = jnp.dtype(w_t.dtype).itemsize
    bpe_o = jnp.dtype(out_dtype).itemsize
    vmem_est = (
        2 * tm * tk * bpe_x
        + 2 * tk * d_pad * bpe_w
        + 2 * d_pad * jnp.dtype(b2d.dtype).itemsize
        + 2 * tm * d_pad * bpe_o
        + tm * d_pad * 4
    )
    # Leave headroom for Mosaic internal scratch; cap under v7x's 64 MiB VMEM.
    vmem_limit = min(max(int(vmem_est * 2), 16 << 20), 48 << 20)

    kernel = functools.partial(_token_embedding_kernel, scale=scale)

    out2d = pl.pallas_call(
        kernel,
        out_shape=jax.ShapeDtypeStruct((m_pad, d_pad), out_dtype),
        grid_spec=pltpu.PrefetchScalarGridSpec(
            num_scalar_prefetch=0,
            grid=grid,
            in_specs=[
                pl.BlockSpec((tm, tk), lambda i, k: (i, k)),
                pl.BlockSpec((tk, d_pad), lambda i, k: (k, 0)),
                pl.BlockSpec((1, d_pad), lambda i, k: (0, 0)),
            ],
            out_specs=pl.BlockSpec((tm, d_pad), lambda i, k: (i, 0)),
            scratch_shapes=[pltpu.VMEM((tm, d_pad), jnp.float32)],
        ),
        compiler_params=pltpu.CompilerParams(
            dimension_semantics=("parallel", "arbitrary"),
            vmem_limit_bytes=vmem_limit,
        ),
    )(x2d, w_t, b2d)

    out = out2d[:m, :d_embed]
    return out.reshape(*orig_shape[:-1], d_embed)


def token_embedding(
    x,
    weight,
    bias,
    *,
    tile_m=DEFAULT_TILE_M,
    tile_k=DEFAULT_TILE_K,
    compute_dtype=None,
    out_dtype=None,
):
    """Convenience wrapper: prepares params (transpose + pad) then runs the kernel.

    For repeated calls with the same weights, call prepare_token_embedding_params()
    once and use token_embedding_prepared() to avoid re-doing the layout work.
    """
    d_embed, vocab_size = weight.shape
    w_t, b2d = prepare_token_embedding_params(weight, bias, tile_k=tile_k)
    return token_embedding_prepared(
        x,
        w_t,
        b2d,
        d_embed=d_embed,
        vocab_size=vocab_size,
        tile_m=tile_m,
        tile_k=tile_k,
        compute_dtype=compute_dtype,
        out_dtype=out_dtype,
    )


if __name__ == "__main__":
    # Shapes consistent with the module's forward:
    # x: (batch, seq, vocab_size) -> out: (batch, seq, d_embed)
    batch, seq = 2, 8
    vocab_size, d_embed = 128, 32

    key = jax.random.PRNGKey(0)
    kx, kw, kb = jax.random.split(key, 3)

    x = jax.random.normal(kx, (batch, seq, vocab_size), dtype=jnp.float32)
    bound = 1.0 / math.sqrt(vocab_size)
    weight = jax.random.uniform(
        kw, (d_embed, vocab_size), minval=-bound, maxval=bound, dtype=jnp.float32
    )
    bias = jax.random.uniform(
        kb, (d_embed,), minval=-bound, maxval=bound, dtype=jnp.float32
    )

    out = token_embedding(x, weight, bias)
    jax.block_until_ready(out)

    ref = jax.nn.sigmoid(x @ weight.T + bias) * math.sqrt(d_embed)
    assert out.shape == (batch, seq, d_embed)
    assert jnp.allclose(out, ref, atol=1e-5, rtol=1e-5)

    # Irregular shapes: exercises M/K/D padding and the multi-step K reduction
    # (accumulator init / finalize via pl.when).
    b2, s2, v2, d2 = 3, 5, 300, 48
    kx2, kw2, kb2 = jax.random.split(jax.random.PRNGKey(1), 3)
    x2 = jax.random.normal(kx2, (b2, s2, v2), dtype=jnp.float32)
    w2 = jax.random.uniform(kw2, (d2, v2), minval=-0.1, maxval=0.1, dtype=jnp.float32)
    bb2 = jax.random.uniform(kb2, (d2,), minval=-0.1, maxval=0.1, dtype=jnp.float32)

    out2 = token_embedding(x2, w2, bb2, tile_m=8, tile_k=128)
    jax.block_until_ready(out2)
    ref2 = jax.nn.sigmoid(x2 @ w2.T + bb2) * math.sqrt(d2)
    assert out2.shape == (b2, s2, d2)
    assert jnp.allclose(out2, ref2, atol=1e-5, rtol=1e-5)

    print("KERNEL_OK")
</pallas_src>

<mosaic_0001>
module attributes {stable_mosaic.version = 11 : i64} {
  func.func @_token_embedding_kernel(%arg0: i32, %arg1: i32, %arg2: memref<16x128xf32, #tpu.memory_space<vmem>>, %arg3: memref<128x128xf32, #tpu.memory_space<vmem>>, %arg4: memref<1x128xf32, #tpu.memory_space<vmem>>, %arg5: memref<16x128xf32, #tpu.memory_space<vmem>>, %arg6: memref<16x128xf32, #tpu.memory_space<vmem>>) attributes {dimension_semantics = [#tpu.dimension_semantics<parallel>, #tpu.dimension_semantics<arbitrary>], iteration_bounds = array<i64: 1, 1>, scalar_prefetch = 0 : i64, scratch_operands = 1 : i64, tpu.core_type = #tpu.core_type<tc>, window_params = [{transform_indices = @transform_0, window_bounds = array<i64: 16, 128>}, {transform_indices = @transform_1, window_bounds = array<i64: 128, 128>}, {pipeline_mode = #tpu.pipeline_mode<synchronous>, transform_indices = @transform_2, window_bounds = array<i64: 1, 128>}, {transform_indices = @transform_3, window_bounds = array<i64: 16, 128>}]} {
    %c0_i32 = arith.constant 0 : i32
    %0 = arith.cmpi eq, %arg1, %c0_i32 : i32
    %1 = arith.extui %0 : i1 to i32
    %c0_i32_0 = arith.constant 0 : i32
    %2 = arith.cmpi ne, %1, %c0_i32_0 : i32
    scf.if %2 {
      %cst_10 = arith.constant 0.000000e+00 : f32
      %12 = vector.broadcast %cst_10 : f32 to vector<16x128xf32>
      %c0_11 = arith.constant 0 : index
      %c0_12 = arith.constant 0 : index
      %13 = vector.load %arg6[%c0_11, %c0_12] : memref<16x128xf32, #tpu.memory_space<vmem>>, vector<16x128xf32>
      tpu.vector_store %arg6[%c0_11, %c0_12], %12 {strides = array<i32>} : memref<16x128xf32, #tpu.memory_space<vmem>>, vector<16x128xf32>,
    } else {
    }
    %c0 = arith.constant 0 : index
    %c0_1 = arith.constant 0 : index
    %3 = vector.load %arg6[%c0, %c0_1] : memref<16x128xf32, #tpu.memory_space<vmem>>, vector<16x128xf32>
    %c0_2 = arith.constant 0 : index
    %c0_3 = arith.constant 0 : index
    %4 = vector.load %arg2[%c0_2, %c0_3] : memref<16x128xf32, #tpu.memory_space<vmem>>, vector<16x128xf32>
    %c0_4 = arith.constant 0 : index
    %c0_5 = arith.constant 0 : index
    %5 = vector.load %arg3[%c0_4, %c0_5] : memref<128x128xf32, #tpu.memory_space<vmem>>, vector<128x128xf32>
    %cst = arith.constant dense<0.000000e+00> : vector<16x128xf32>
    %6 = tpu.matmul %4, %5, %cst {dimension_numbers = #tpu.dot_dimension_numbers<[1], [0], [0], [1], [0, 0, 1, 1], [], []>} : vector<16x128xf32>, vector<128x128xf32>, vector<16x128xf32> -> vector<16x128xf32>
    %7 = arith.addf %3, %6 : vector<16x128xf32>
    %c0_6 = arith.constant 0 : index
    %c0_7 = arith.constant 0 : index
    %8 = vector.load %arg6[%c0_6, %c0_7] : memref<16x128xf32, #tpu.memory_space<vmem>>, vector<16x128xf32>
    tpu.vector_store %arg6[%c0_6, %c0_7], %7 {strides = array<i32>} : memref<16x128xf32, #tpu.memory_space<vmem>>, vector<16x128xf32>,
    %c0_i32_8 = arith.constant 0 : i32
    %9 = arith.cmpi eq, %arg1, %c0_i32_8 : i32
    %10 = arith.extui %9 : i1 to i32
    %c0_i32_9 = arith.constant 0 : i32
    %11 = arith.cmpi ne, %10, %c0_i32_9 : i32
    scf.if %11 {
      %c0_10 = arith.constant 0 : index
      %c0_11 = arith.constant 0 : index
      %12 = vector.load %arg6[%c0_10, %c0_11] : memref<16x128xf32, #tpu.memory_space<vmem>>, vector<16x128xf32>
      %c0_12 = arith.constant 0 : index
      %c0_13 = arith.constant 0 : index
      %13 = vector.load %arg4[%c0_12, %c0_13] : memref<1x128xf32, #tpu.memory_space<vmem>>, vector<1x128xf32>
      %14 = vector.broadcast %13 : vector<1x128xf32> to vector<16x128xf32>
      %15 = arith.addf %12, %14 : vector<16x128xf32>
      %16 = arith.negf %15 : vector<16x128xf32>
      %17 = math.exp %16 : vector<16x128xf32>
      %cst_14 = arith.constant 1.000000e+00 : f32
      %18 = vector.broadcast %cst_14 : f32 to vector<16x128xf32>
      %19 = arith.addf %18, %17 : vector<16x128xf32>
      %20 = arith.divf %18, %19 : vector<16x128xf32>
      %cst_15 = arith.constant 5.65685415 : f32
      %21 = vector.broadcast %cst_15 : f32 to vector<16x128xf32>
      %22 = arith.mulf %20, %21 : vector<16x128xf32>
      %c0_16 = arith.constant 0 : index
      %c0_17 = arith.constant 0 : index
      %23 = vector.load %arg5[%c0_16, %c0_17] : memref<16x128xf32, #tpu.memory_space<vmem>>, vector<16x128xf32>
      tpu.vector_store %arg5[%c0_16, %c0_17], %22 {strides = array<i32>} : memref<16x128xf32, #tpu.memory_space<vmem>>, vector<16x128xf32>,
    } else {
    }
    return
  }
  func.func @transform_0(%arg0: i32, %arg1: i32) -> (i32, i32) {
    %c0_i32 = arith.constant 0 : i32
    return %arg0, %arg1 : i32, i32
  }
  func.func @transform_1(%arg0: i32, %arg1: i32) -> (i32, i32) {
    %c0_i32 = arith.constant 0 : i32
    %c0_i32_0 = arith.constant 0 : i32
    return %arg1, %c0_i32 : i32, i32
  }
  func.func @transform_2(%arg0: i32, %arg1: i32) -> (i32, i32) {
    %c0_i32 = arith.constant 0 : i32
    %c0_i32_0 = arith.constant 0 : i32
    %c0_i32_1 = arith.constant 0 : i32
    return %c0_i32, %c0_i32_0 : i32, i32
  }
  func.func @transform_3(%arg0: i32, %arg1: i32) -> (i32, i32) {
    %c0_i32 = arith.constant 0 : i32
    %c0_i32_0 = arith.constant 0 : i32
    return %arg0, %c0_i32 : i32, i32
  }
}

</mosaic_0001>

<bundles_post_ra>
// kernel: tpu_custom_call.1
= control target key start
LH: loop header
LB: loop body
LE: loop exit
PB: predicated region body
PF: predicated region fallthrough
CT: control target
= control target key end

     0   :  { %8 = vsyncpa [#allocation4], 0  ;;  %s329_s0 = inlined_call_operand.hbm [shape: f32[16,128], index: 0, kind: input, shape index: {}]   ;;  %s330_s1 = inlined_call_operand.hbm [shape: f32[128,128], index: 1, kind: input, shape index: {}]   ;;  %s331_s2 = inlined_call_operand.vmem [shape: f32[1,128], index: 2, kind: input, shape index: {}]   ;;  %s332_s3 = inlined_call_operand.hbm [shape: f32[16,128], index: 3, kind: output, shape index: {}]  }
   0x1   :  { %9 = vsyncpa [#allocation7], 0 }
   0x2   :  { %10 = vsyncpa [#allocation5], 0  ;;  %s15_s14 = sshll.u32 %s329_s0, 4  ;;  %s283_s15 = smov [#allocation3]   ;;  %s16_s14 = int_to_ptr.hbm [resolvable:$true] %s15_s14 }
   0x3   :  { %s17_s16 = sshll.u32 %s283_s15, 4  ;;  %s28_s19 = sshll.u32 %s330_s1, 4  ;;  %s18_s16 = int_to_ptr.vmem [resolvable:$true] %s17_s16  ;;  %s29_s19 = int_to_ptr.hbm [resolvable:$true] %s28_s19 }
   0x4   :  { %s284_s20 = smov 128   ;;  %s285_s21 = smov 8  }
   0x5   :  { %23 = dma.hbm_to_vmem [thread:$0]  %s16_s14, 256, %s18_s16, [#allocation4], %s284_s20, %s284_s20, %s285_s21  }
   0x6   :  { %s286_s22 = smov [#allocation6]  }
   0x7   :  { %s30_s23 = sshll.u32 %s286_s22, 4  ;;  %s31_s23 = int_to_ptr.vmem [resolvable:$true] %s30_s23 }
   0x8   :  { %36 = dma.hbm_to_vmem [thread:$0]  %s29_s19, 2048, %s31_s23, [#allocation7], %s284_s20, %s284_s20, %s285_s21  }
   0x9   :  { %277 = dma.done.wait [#allocation4], 256  }
   0xa   :  { %278 = vsyncadd [#allocation4], 4294967040 }
   0xb   :  { %279 = dma.done.wait [#allocation7], 2048  }
   0xc   :  { %280 = vsyncadd [#allocation7], 4294965248  ;;  %v72_v0 = vld [vmem:[#allocation6 + $0x78] sm:$0xff]  ;;  %v71_v1 = vld [vmem:[#allocation6 + $0x70] sm:$0xff]  ;;  %s159_s27 = sshll.u32 %s332_s3, 4  ;;  %s160_s27 = int_to_ptr.hbm [resolvable:$true] %s159_s27 }
   0xd   :  { %73 = vmatpush.msra.mxu0 %v72_v0  ;;  %175 = vmatpush.msra.mxu1 %v72_v0  ;;  %v70_v2 = vld [vmem:[#allocation6 + $0x68] sm:$0xff]  ;;  %v69_v3 = vld [vmem:[#allocation6 + $0x60] sm:$0xff]  ;;  %v68_v4 = vld [vmem:[#allocation6 + $0x58] sm:$0xff] }
   0xe   :  { %v67_v5 = vld [vmem:[#allocation6 + $0x50] sm:$0xff]  ;;  %v66_v6 = vld [vmem:[#allocation6 + $0x48] sm:$0xff]  ;;  %v65_v7 = vld [vmem:[#allocation6 + $0x40] sm:$0xff] }
   0xf   :  { %74 = vmatpush.msra.mxu0 %v71_v1  ;;  %176 = vmatpush.msra.mxu1 %v71_v1  ;;  %v64_v8 = vld [vmem:[#allocation6 + $0x38] sm:$0xff]  ;;  %v63_v9 = vld [vmem:[#allocation6 + $0x30] sm:$0xff]  ;;  %v62_v10 = vld [vmem:[#allocation6 + $0x28] sm:$0xff] }
  0x10   :  { %v61_v11 = vld [vmem:[#allocation6 + $0x20] sm:$0xff]  ;;  %v60_v12 = vld [vmem:[#allocation6 + $0x18] sm:$0xff]  ;;  %v59_v13 = vld [vmem:[#allocation6 + $0x10] sm:$0xff] }
  0x11   :  { %75 = vmatpush.msra.mxu0 %v70_v2  ;;  %177 = vmatpush.msra.mxu1 %v70_v2  ;;  %v58_v14 = vld [vmem:[#allocation6 + $0x8] sm:$0xff]  ;;  %v57_v15 = vld [vmem:[#allocation6] sm:$0xff]  ;;  %v55_v16 = vld [vmem:[#allocation3] sm:$0xff] }
  0x12   :  { %v56_v17 = vld [vmem:[#allocation3 + $0x8] sm:$0xff]  ;;  %v196_v18 = vld [vmem:[%s331_s2] ss:$0 sm:$0xff]  ;;  %s287_s2 = smov [#allocation8]  }
  0x13   :  { %76 = vmatpush.msra.mxu0 %v69_v3  ;;  %178 = vmatpush.msra.mxu1 %v69_v3  ;;  %s157_s24 = sshll.u32 %s287_s2, 4  ;;  %s158_s24 = int_to_ptr.vmem [resolvable:$true] %s157_s24 }
  0x15   :  { %77 = vmatpush.msra.mxu0 %v68_v4  ;;  %179 = vmatpush.msra.mxu1 %v68_v4 }
  0x17   :  { %78 = vmatpush.msra.mxu0 %v67_v5  ;;  %180 = vmatpush.msra.mxu1 %v67_v5 }
  0x19   :  { %79 = vmatpush.msra.mxu0 %v66_v6  ;;  %181 = vmatpush.msra.mxu1 %v66_v6 }
  0x1b   :  { %80 = vmatpush.msra.mxu0 %v65_v7  ;;  %182 = vmatpush.msra.mxu1 %v65_v7 }
  0x1d   :  { %81 = vmatpush.msra.mxu0 %v64_v8  ;;  %183 = vmatpush.msra.mxu1 %v64_v8 }
  0x1f   :  { %82 = vmatpush.msra.mxu0 %v63_v9  ;;  %184 = vmatpush.msra.mxu1 %v63_v9 }
  0x21   :  { %83 = vmatpush.msra.mxu0 %v62_v10  ;;  %185 = vmatpush.msra.mxu1 %v62_v10 }
  0x23   :  { %84 = vmatpush.msra.mxu0 %v61_v11  ;;  %186 = vmatpush.msra.mxu1 %v61_v11 }
  0x25   :  { %85 = vmatpush.msra.mxu0 %v60_v12  ;;  %187 = vmatpush.msra.mxu1 %v60_v12 }
  0x27   :  { %86 = vmatpush.msra.mxu0 %v59_v13  ;;  %188 = vmatpush.msra.mxu1 %v59_v13 }
  0x29   :  { %87 = vmatpush.msra.mxu0 %v58_v14  ;;  %189 = vmatpush.msra.mxu1 %v58_v14 }
  0x2b   :  { %88 = vmatpush.msra.mxu0 %v57_v15  ;;  %190 = vmatpush.msra.mxu1 %v57_v15 }
  0x2c   :  { %89 = vmatmul.f32.vlgmr.msra.gmra.mxu0 %v55_v16  ;;  %92 = vmatmul.f32.vlgmr.msra.gmra.mxu1 %v56_v17 }
  0xa9   :  { %v90_v19 = vpop.f32.mrf.mxu0  ;;  %v93_v20 = vpop.f32.mrf.mxu1 }
  0xaa   :  { %v109_v21 = vadd.f32 %v196_v18, %v90_v19  ;;  %v110_v22 = vadd.f32 %v196_v18, %v93_v20 }
  0xac   :  { %v173_v23 = vmul.f32 -1.442695, %v109_v21  ;;  %v174_v24 = vmul.f32 -1.442695, %v110_v22 }
  0xae   :  { %197 = vpow2.f32 %v173_v23 }
  0xaf   :  { %199 = vpow2.f32 %v174_v24 }
  0xb4   :  { %v198_v25 = vpop.eup %197 }
  0xb5   :  { %v200_v26 = vpop.eup %199  ;;  %v117_v27 = vadd.f32 1.0, %v198_v25 }
  0xb6   :  { %v118_v28 = vadd.f32 1.0, %v200_v26 }
  0xb7   :  { %201 = vrcp.f32 %v117_v27  ;;  %v130_v35 = vand.u32 2147483648, %v117_v27  ;;  %v128_v37 = vand.u32 2147483647, %v117_v27  ;;  %vm124_vm2 = vweird.f32 %v117_v27 }
  0xb8   :  { %203 = vrcp.f32 %v118_v28  ;;  %v145_v38 = vand.u32 2147483648, %v118_v28  ;;  %v143_v40 = vand.u32 2147483647, %v118_v28  ;;  %vm139_vm4 = vweird.f32 %v118_v28 }
  0xb9   :  { %v131_v42 = vor.u32 1.1754944e-38, %v130_v35  ;;  %vm129_vm5 = vcmp.eq.f32.partialorder %v128_v37, 8.507059e+37 }
  0xba   :  { %v146_v45 = vor.u32 1.1754944e-38, %v145_v38  ;;  %vm144_vm7 = vcmp.eq.f32.partialorder %v143_v40, 8.507059e+37 }
  0xbd   :  { %v202_v29 = vpop.eup %201 }
  0xbe   :  { %v204_v30 = vpop.eup %203  ;;  %v120_v31 = vmul.f32 %v202_v29, %v117_v27  ;;  %vm125_vm0 = vweird.f32 %v202_v29 }
  0xbf   :  { %v135_v32 = vmul.f32 %v204_v30, %v118_v28  ;;  %vm140_vm1 = vweird.f32 %v204_v30  ;;  %vm126_vm3 = vmor %vm124_vm2, %vm125_vm0 }
  0xc0   :  { %v121_v33 = vsub.f32 1.0, %v120_v31  ;;  %vm141_vm6 = vmor %vm139_vm4, %vm140_vm1 }
  0xc1   :  { %v136_v34 = vsub.f32 1.0, %v135_v32 }
  0xc2   :  { %v122_v36 = vmul.f32 %v202_v29, %v121_v33 }
  0xc3   :  { %v137_v39 = vmul.f32 %v204_v30, %v136_v34 }
  0xc4   :  { %v123_v41 = vadd.f32 %v202_v29, %v122_v36 }
  0xc5   :  { %v138_v43 = vadd.f32 %v204_v30, %v137_v39 }
  0xc6   :  { %v127_v44 = vsel %vm126_vm3, %v202_v29, %v123_v41 }
  0xc7   :  { %v132_v46 = vsel %vm129_vm5, %v131_v42, %v127_v44  ;;  %v142_v47 = vsel %vm141_vm6, %v204_v30, %v138_v43 }
  0xc8   :  { %v147_v48 = vsel %vm144_vm7, %v146_v45, %v142_v47  ;;  %v149_v49 = vmul.f32 5.656854, %v132_v46 }
  0xc9   :  { %v150_v50 = vmul.f32 5.656854, %v147_v48 }
  0xca   :  { %151 = vst [vmem:[#allocation8] sm:$0xff] %v149_v49 }
  0xcb   :  { %152 = vst [vmem:[#allocation8 + $0x8] sm:$0xff] %v150_v50 }
  0xcc   :  { %165 = dma.vmem_to_hbm [thread:$0]  %s158_s24, 256, %s160_s27, [#allocation5], %s284_s20, %s284_s20, %s285_s21  }
  0xcd   :  { %281 = dma.done.wait [#allocation5], 256  }
  0xce   :  { %282 = vsyncadd [#allocation5], 4294967040 }
  0xcf   :  { %170 = vsyncpa [#allocation4], 1 }
  0xd0   :  { %171 = vsyncpa [#allocation7], 1 }
  0xd1   :  { %172 = vsyncpa [#allocation5], 1 }

</bundles_post_ra>
